<compile_context>
chip_gen: v5e
topology: v5e:2x2
jax: 0.10.0
libtpu: 0.0.40
codegen_flags: <defaults>
</compile_context>

<pallas_src>
import jax
import jax.numpy as jnp
from jax.experimental import pallas as pl
from jax.experimental.pallas import tpu as pltpu

IN_FEATS = 28 * 28        # 784
K1_PAD = 896              # 784 padded to a multiple of 128
H1, H2 = 256, 128
OUT_FEATS = 10
N3_PAD = 128              # 10 padded to a full 128-lane output


def _round_up(x, m):
    return ((x + m - 1) // m) * m


def mlp_kernel(x_ref, w1_ref, b1_ref, w2_ref, b2_ref, w3_ref, b3_ref, o_ref):
    # x: (TM, 896) bf16 tile of the (padded) batch.
    x = x_ref[...]

    # Layer 1: Linear(784 -> 256) + ReLU.  bf16 operands, f32 accumulation.
    h1 = jnp.dot(x, w1_ref[...], preferred_element_type=jnp.float32)
    h1 = jnp.maximum(h1 + b1_ref[...], 0.0).astype(jnp.bfloat16)

    # Layer 2: Linear(256 -> 128) + ReLU.
    h2 = jnp.dot(h1, w2_ref[...], preferred_element_type=jnp.float32)
    h2 = jnp.maximum(h2 + b2_ref[...], 0.0).astype(jnp.bfloat16)

    # Layer 3: Linear(128 -> 10), output padded to 128 lanes (cols 10..127 are
    # exact zeros because w3/b3 are zero-padded).
    out = jnp.dot(h2, w3_ref[...], preferred_element_type=jnp.float32) + b3_ref[...]
    o_ref[...] = out.astype(o_ref.dtype)


def mlp_forward(x_nchw, params):
    """x_nchw: (B, 1, 28, 28) float32.  Returns logits (B, 10) float32."""
    w1, b1, w2, b2, w3, b3 = params
    B = x_nchw.shape[0]

    # nn.Flatten(): row-major flatten of all dims but batch.
    x = x_nchw.reshape(B, -1)  # (B, 784)

    # Batch tile: up to 256 rows per grid step, sublane-aligned (multiple of 8).
    TM = min(256, _round_up(B, 8))
    B_pad = _round_up(B, TM)
    grid = (B_pad // TM,)

    # Pad + cast to lane-dense bf16 operands (weight padding folds into the
    # compiled graph / is a one-time cost; pad rows/cols are exact zeros so the
    # math is unchanged).
    x_p = jnp.zeros((B_pad, K1_PAD), jnp.bfloat16)
    x_p = x_p.at[:B, :IN_FEATS].set(x.astype(jnp.bfloat16))
    w1_p = jnp.zeros((K1_PAD, H1), jnp.bfloat16).at[:IN_FEATS, :].set(
        w1.astype(jnp.bfloat16))
    w2_b = w2.astype(jnp.bfloat16)                       # (256, 128)
    w3_p = jnp.zeros((H2, N3_PAD), jnp.bfloat16).at[:, :OUT_FEATS].set(
        w3.astype(jnp.bfloat16))
    b1_f = b1.astype(jnp.float32)                        # (1, 256)
    b2_f = b2.astype(jnp.float32)                        # (1, 128)
    b3_p = jnp.zeros((1, N3_PAD), jnp.float32).at[:, :OUT_FEATS].set(
        b3.astype(jnp.float32))

    # Constant index_map => weights/biases stay resident in VMEM across the
    # batch grid (no re-DMA per step).
    const = lambda i: (0, 0)
    in_specs = [
        pl.BlockSpec((TM, K1_PAD), lambda i: (i, 0)),    # x tile (pipelined)
        pl.BlockSpec((K1_PAD, H1), const),               # w1 (resident)
        pl.BlockSpec((1, H1), const),                    # b1
        pl.BlockSpec((H1, H2), const),                   # w2
        pl.BlockSpec((1, H2), const),                    # b2
        pl.BlockSpec((H2, N3_PAD), const),               # w3 (padded cols)
        pl.BlockSpec((1, N3_PAD), const),                # b3 (padded cols)
    ]
    out_spec = pl.BlockSpec((TM, N3_PAD), lambda i: (i, 0))

    flops = 2 * B * (IN_FEATS * H1 + H1 * H2 + H2 * OUT_FEATS)
    bytes_accessed = (
        B_pad * K1_PAD * 2                                # x (bf16)
        + (K1_PAD * H1 + H1 * H2 + H2 * N3_PAD) * 2       # weights (bf16)
        + (H1 + H2 + N3_PAD) * 4                          # biases (f32)
        + B_pad * N3_PAD * 4                              # out (f32)
    )

    out_pad = pl.pallas_call(
        mlp_kernel,
        out_shape=jax.ShapeDtypeStruct((B_pad, N3_PAD), jnp.float32),
        grid=grid,
        in_specs=in_specs,
        out_specs=out_spec,
        compiler_params=pltpu.CompilerParams(
            dimension_semantics=("parallel",)),
        cost_estimate=pl.CostEstimate(
            flops=flops, transcendentals=0, bytes_accessed=bytes_accessed),
    )(x_p, w1_p, b1_f, w2_b, b2_f, w3_p, b3_p)

    # Strip batch padding and the 10->128 output-lane padding.
    return out_pad[:B, :OUT_FEATS]


def init_params(key):
    """Deterministic init mimicking PyTorch nn.Linear default
    (uniform(-1/sqrt(fan_in), 1/sqrt(fan_in))).  Weights stored as (in, out)
    so the kernel does x @ W (== PyTorch x @ W.T)."""
    dims = [(IN_FEATS, H1), (H1, H2), (H2, OUT_FEATS)]
    params = []
    for (fan_in, fan_out) in dims:
        key, kw, kb = jax.random.split(key, 3)
        bound = 1.0 / jnp.sqrt(fan_in)
        w = jax.random.uniform(kw, (fan_in, fan_out), jnp.float32, -bound, bound)
        b = jax.random.uniform(kb, (1, fan_out), jnp.float32, -bound, bound)
        params += [w, b]
    return tuple(params)


def reference_forward(x_nchw, params):
    """Pure-JAX reference mirroring the kernel's bf16-operand / f32-accum math."""
    w1, b1, w2, b2, w3, b3 = params
    x = x_nchw.reshape(x_nchw.shape[0], -1).astype(jnp.bfloat16)
    h1 = jnp.dot(x, w1.astype(jnp.bfloat16),
                 preferred_element_type=jnp.float32) + b1
    h1 = jnp.maximum(h1, 0.0).astype(jnp.bfloat16)
    h2 = jnp.dot(h1, w2.astype(jnp.bfloat16),
                 preferred_element_type=jnp.float32) + b2
    h2 = jnp.maximum(h2, 0.0).astype(jnp.bfloat16)
    return jnp.dot(h2, w3.astype(jnp.bfloat16),
                   preferred_element_type=jnp.float32) + b3


if __name__ == "__main__":
    key = jax.random.PRNGKey(0)
    key, kx = jax.random.split(key)

    B = 8  # small demo batch (kernel tiles/parallelizes larger batches)
    x = jax.random.normal(kx, (B, 1, 28, 28), jnp.float32)  # NCHW like MNIST

    params = init_params(key)

    fwd = jax.jit(mlp_forward)
    out = fwd(x, params)
    out = jax.block_until_ready(out)

    ref = reference_forward(x, params)
    assert out.shape == (B, OUT_FEATS)
    assert jnp.allclose(out, ref, atol=1e-2, rtol=1e-2), "mismatch vs reference"

    print("KERNEL_OK")
</pallas_src>

<mosaic_0001>
module attributes {stable_mosaic.version = 11 : i64} {
  func.func @mlp_kernel(%arg0: i32, %arg1: memref<8x896xbf16, #tpu.memory_space<vmem>>, %arg2: memref<896x256xbf16, #tpu.memory_space<vmem>>, %arg3: memref<1x256xf32, #tpu.memory_space<vmem>>, %arg4: memref<256x128xbf16, #tpu.memory_space<vmem>>, %arg5: memref<1x128xf32, #tpu.memory_space<vmem>>, %arg6: memref<128x128xbf16, #tpu.memory_space<vmem>>, %arg7: memref<1x128xf32, #tpu.memory_space<vmem>>, %arg8: memref<8x128xf32, #tpu.memory_space<vmem>>) attributes {dimension_semantics = [#tpu.dimension_semantics<parallel>], iteration_bounds = array<i64: 1>, scalar_prefetch = 0 : i64, scratch_operands = 0 : i64, tpu.core_type = #tpu.core_type<tc>, window_params = [{transform_indices = @transform_0, window_bounds = array<i64: 8, 896>}, {pipeline_mode = #tpu.pipeline_mode<synchronous>, transform_indices = @transform_1, window_bounds = array<i64: 896, 256>}, {pipeline_mode = #tpu.pipeline_mode<synchronous>, transform_indices = @transform_2, window_bounds = array<i64: 1, 256>}, {pipeline_mode = #tpu.pipeline_mode<synchronous>, transform_indices = @transform_3, window_bounds = array<i64: 256, 128>}, {pipeline_mode = #tpu.pipeline_mode<synchronous>, transform_indices = @transform_4, window_bounds = array<i64: 1, 128>}, {pipeline_mode = #tpu.pipeline_mode<synchronous>, transform_indices = @transform_5, window_bounds = array<i64: 128, 128>}, {pipeline_mode = #tpu.pipeline_mode<synchronous>, transform_indices = @transform_6, window_bounds = array<i64: 1, 128>}, {transform_indices = @transform_7, window_bounds = array<i64: 8, 128>}]} {
    %c0 = arith.constant 0 : index
    %c0_0 = arith.constant 0 : index
    %0 = vector.load %arg1[%c0, %c0_0] : memref<8x896xbf16, #tpu.memory_space<vmem>>, vector<8x896xbf16>
    %c0_1 = arith.constant 0 : index
    %c0_2 = arith.constant 0 : index
    %1 = vector.load %arg2[%c0_1, %c0_2] : memref<896x256xbf16, #tpu.memory_space<vmem>>, vector<896x256xbf16>
    %cst = arith.constant dense<0.000000e+00> : vector<8x256xf32>
    %2 = tpu.matmul %0, %1, %cst {dimension_numbers = #tpu.dot_dimension_numbers<[1], [0], [0], [1], [0, 0, 1, 1], [], []>} : vector<8x896xbf16>, vector<896x256xbf16>, vector<8x256xf32> -> vector<8x256xf32>
    %c0_3 = arith.constant 0 : index
    %c0_4 = arith.constant 0 : index
    %3 = vector.load %arg3[%c0_3, %c0_4] : memref<1x256xf32, #tpu.memory_space<vmem>>, vector<1x256xf32>
    %4 = vector.broadcast %3 : vector<1x256xf32> to vector<8x256xf32>
    %5 = arith.addf %2, %4 : vector<8x256xf32>
    %cst_5 = arith.constant 0.000000e+00 : f32
    %6 = vector.broadcast %cst_5 : f32 to vector<8x256xf32>
    %7 = arith.maximumf %5, %6 : vector<8x256xf32>
    %8 = arith.truncf %7 : vector<8x256xf32> to vector<8x256xbf16>
    %c0_6 = arith.constant 0 : index
    %c0_7 = arith.constant 0 : index
    %9 = vector.load %arg4[%c0_6, %c0_7] : memref<256x128xbf16, #tpu.memory_space<vmem>>, vector<256x128xbf16>
    %cst_8 = arith.constant dense<0.000000e+00> : vector<8x128xf32>
    %10 = tpu.matmul %8, %9, %cst_8 {dimension_numbers = #tpu.dot_dimension_numbers<[1], [0], [0], [1], [0, 0, 1, 1], [], []>} : vector<8x256xbf16>, vector<256x128xbf16>, vector<8x128xf32> -> vector<8x128xf32>
    %c0_9 = arith.constant 0 : index
    %c0_10 = arith.constant 0 : index
    %11 = vector.load %arg5[%c0_9, %c0_10] : memref<1x128xf32, #tpu.memory_space<vmem>>, vector<1x128xf32>
    %12 = vector.broadcast %11 : vector<1x128xf32> to vector<8x128xf32>
    %13 = arith.addf %10, %12 : vector<8x128xf32>
    %cst_11 = arith.constant 0.000000e+00 : f32
    %14 = vector.broadcast %cst_11 : f32 to vector<8x128xf32>
    %15 = arith.maximumf %13, %14 : vector<8x128xf32>
    %16 = arith.truncf %15 : vector<8x128xf32> to vector<8x128xbf16>
    %c0_12 = arith.constant 0 : index
    %c0_13 = arith.constant 0 : index
    %17 = vector.load %arg6[%c0_12, %c0_13] : memref<128x128xbf16, #tpu.memory_space<vmem>>, vector<128x128xbf16>
    %cst_14 = arith.constant dense<0.000000e+00> : vector<8x128xf32>
    %18 = tpu.matmul %16, %17, %cst_14 {dimension_numbers = #tpu.dot_dimension_numbers<[1], [0], [0], [1], [0, 0, 1, 1], [], []>} : vector<8x128xbf16>, vector<128x128xbf16>, vector<8x128xf32> -> vector<8x128xf32>
    %c0_15 = arith.constant 0 : index
    %c0_16 = arith.constant 0 : index
    %19 = vector.load %arg7[%c0_15, %c0_16] : memref<1x128xf32, #tpu.memory_space<vmem>>, vector<1x128xf32>
    %20 = vector.broadcast %19 : vector<1x128xf32> to vector<8x128xf32>
    %21 = arith.addf %18, %20 : vector<8x128xf32>
    %c0_17 = arith.constant 0 : index
    %c0_18 = arith.constant 0 : index
    %22 = vector.load %arg8[%c0_17, %c0_18] : memref<8x128xf32, #tpu.memory_space<vmem>>, vector<8x128xf32>
    tpu.vector_store %arg8[%c0_17, %c0_18], %21 {strides = array<i32>} : memref<8x128xf32, #tpu.memory_space<vmem>>, vector<8x128xf32>,
    return
  }
  func.func @transform_0(%arg0: i32) -> (i32, i32) {
    %c0_i32 = arith.constant 0 : i32
    %c0_i32_0 = arith.constant 0 : i32
    return %arg0, %c0_i32 : i32, i32
  }
  func.func @transform_1(%arg0: i32) -> (i32, i32) {
    %c0_i32 = arith.constant 0 : i32
    %c0_i32_0 = arith.constant 0 : i32
    %c0_i32_1 = arith.constant 0 : i32
    return %c0_i32, %c0_i32_0 : i32, i32
  }
  func.func @transform_2(%arg0: i32) -> (i32, i32) {
    %c0_i32 = arith.constant 0 : i32
    %c0_i32_0 = arith.constant 0 : i32
    %c0_i32_1 = arith.constant 0 : i32
    return %c0_i32, %c0_i32_0 : i32, i32
  }
  func.func @transform_3(%arg0: i32) -> (i32, i32) {
    %c0_i32 = arith.constant 0 : i32
    %c0_i32_0 = arith.constant 0 : i32
    %c0_i32_1 = arith.constant 0 : i32
    return %c0_i32, %c0_i32_0 : i32, i32
  }
  func.func @transform_4(%arg0: i32) -> (i32, i32) {
    %c0_i32 = arith.constant 0 : i32
    %c0_i32_0 = arith.constant 0 : i32
    %c0_i32_1 = arith.constant 0 : i32
    return %c0_i32, %c0_i32_0 : i32, i32
  }
  func.func @transform_5(%arg0: i32) -> (i32, i32) {
    %c0_i32 = arith.constant 0 : i32
    %c0_i32_0 = arith.constant 0 : i32
    %c0_i32_1 = arith.constant 0 : i32
    return %c0_i32, %c0_i32_0 : i32, i32
  }
  func.func @transform_6(%arg0: i32) -> (i32, i32) {
    %c0_i32 = arith.constant 0 : i32
    %c0_i32_0 = arith.constant 0 : i32
    %c0_i32_1 = arith.constant 0 : i32
    return %c0_i32, %c0_i32_0 : i32, i32
  }
  func.func @transform_7(%arg0: i32) -> (i32, i32) {
    %c0_i32 = arith.constant 0 : i32
    %c0_i32_0 = arith.constant 0 : i32
    return %arg0, %c0_i32 : i32, i32
  }
}

</mosaic_0001>

<bundles_post_ra>
// kernel: mlp_forward.1
= control target key start
LH: loop header
LB: loop body
LE: loop exit
PB: predicated region body
PF: predicated region fallthrough
CT: control target
= control target key end

     0   :  { %s2724_s0 = inlined_call_operand.vmem [shape: bf16[8,896], index: 0, kind: input, shape index: {}]   ;;  %s2725_s1 = inlined_call_operand.vmem [shape: bf16[896,256], index: 1, kind: input, shape index: {}]   ;;  %s2726_s2 = inlined_call_operand.vmem [shape: f32[1,256], index: 2, kind: input, shape index: {}]   ;;  %s2727_s3 = inlined_call_operand.vmem [shape: bf16[256,128], index: 3, kind: input, shape index: {}]   ;;  %s2728_s4 = inlined_call_operand.vmem [shape: f32[1,128], index: 4, kind: input, shape index: {}]   ;;  %s2729_s5 = inlined_call_operand.vmem [shape: bf16[128,128], index: 5, kind: input, shape index: {}]   ;;  %s2730_s6 = inlined_call_operand.vmem [shape: f32[1,128], index: 6, kind: input, shape index: {}]   ;;  %s2731_s7 = inlined_call_operand.hbm [shape: f32[8,128], index: 7, kind: output, shape index: {}]  }
   0x1   :  { %v1236_v0 = vld [vmem:[%s2725_s1 + $0x70] sm:$0xf]  ;;  %v1737_v1 = vld [vmem:[%s2725_s1 + $0x74] sm:$0xf0]  ;;  %v1228_v9 = vld [vmem:[%s2725_s1 + $0x60] sm:$0xf] }
   0x2   :  { %v1300_v2 = vld [vmem:[%s2725_s1 + $0xf0] sm:$0xf]  ;;  %v1237_v3 = vor.u32 %v1737_v1, %v1236_v0  ;;  %v1753_v4 = vld [vmem:[%s2725_s1 + $0xf4] sm:$0xf0]  ;;  %v1735_v10 = vld [vmem:[%s2725_s1 + $0x64] sm:$0xf0] }
   0x3   :  { %v1364_v5 = vld [vmem:[%s2725_s1 + $0x170] sm:$0xf]  ;;  %v1769_v6 = vld [vmem:[%s2725_s1 + $0x174] sm:$0xf0]  ;;  %v1301_v7 = vor.u32 %v1753_v4, %v1300_v2  ;;  %v1292_v11 = vld [vmem:[%s2725_s1 + $0xe0] sm:$0xf]  ;;  %v1229_v12 = vor.u32 %v1735_v10, %v1228_v9 }
   0x4   :  { %v1365_v8 = vor.u32 %v1769_v6, %v1364_v5  ;;  %734 = vmatpush.bf16.msra.mxu0 %v1237_v3  ;;  %v1751_v13 = vld [vmem:[%s2725_s1 + $0xe4] sm:$0xf0]  ;;  %v1356_v14 = vld [vmem:[%s2725_s1 + $0x160] sm:$0xf]  ;;  %v1220_v18 = vld [vmem:[%s2725_s1 + $0x50] sm:$0xf] }
   0x5   :  { %v1767_v15 = vld [vmem:[%s2725_s1 + $0x164] sm:$0xf0]  ;;  %747 = vmatpush.bf16.msra.mxu1 %v1301_v7  ;;  %v1293_v16 = vor.u32 %v1751_v13, %v1292_v11  ;;  %v1733_v19 = vld [vmem:[%s2725_s1 + $0x54] sm:$0xf0]  ;;  %v1284_v20 = vld [vmem:[%s2725_s1 + $0xd0] sm:$0xf] }
   0x6   :  { %760 = vmatpush.bf16.msra.mxu2 %v1365_v8  ;;  %v1357_v17 = vor.u32 %v1767_v15, %v1356_v14  ;;  %v1749_v21 = vld [vmem:[%s2725_s1 + $0xd4] sm:$0xf0]  ;;  %v1348_v22 = vld [vmem:[%s2725_s1 + $0x150] sm:$0xf]  ;;  %v1221_v24 = vor.u32 %v1733_v19, %v1220_v18  ;;  %v1212_v25 = vld [vmem:[%s2725_s1 + $0x40] sm:$0xf] }
   0x7   :  { %v1765_v23 = vld [vmem:[%s2725_s1 + $0x154] sm:$0xf0]  ;;  %v1731_v26 = vld [vmem:[%s2725_s1 + $0x44] sm:$0xf0]  ;;  %v1285_v27 = vor.u32 %v1749_v21, %v1284_v20  ;;  %v1276_v29 = vld [vmem:[%s2725_s1 + $0xc0] sm:$0xf] }
   0x8   :  { %735 = vmatpush.bf16.msra.mxu0 %v1229_v12  ;;  %v1349_v28 = vor.u32 %v1765_v23, %v1348_v22  ;;  %v1428_v30 = vld [vmem:[%s2725_s1 + $0x1f0] sm:$0xf]  ;;  %v1785_v31 = vld [vmem:[%s2725_s1 + $0x1f4] sm:$0xf0]  ;;  %v1747_v32 = vld [vmem:[%s2725_s1 + $0xc4] sm:$0xf0]  ;;  %v1213_v37 = vor.u32 %v1731_v26, %v1212_v25 }
   0x9   :  { %748 = vmatpush.bf16.msra.mxu1 %v1293_v16  ;;  %v1340_v33 = vld [vmem:[%s2725_s1 + $0x140] sm:$0xf]  ;;  %v1763_v34 = vld [vmem:[%s2725_s1 + $0x144] sm:$0xf0]  ;;  %v1429_v35 = vor.u32 %v1785_v31, %v1428_v30  ;;  %v1204_v38 = vld [vmem:[%s2725_s1 + $0x30] sm:$0xf]  ;;  %v1277_v41 = vor.u32 %v1747_v32, %v1276_v29 }
   0xa   :  { %761 = vmatpush.bf16.msra.mxu2 %v1357_v17  ;;  %v1420_v36 = vld [vmem:[%s2725_s1 + $0x1e0] sm:$0xf]  ;;  %v1729_v39 = vld [vmem:[%s2725_s1 + $0x34] sm:$0xf0]  ;;  %v1783_v40 = vld [vmem:[%s2725_s1 + $0x1e4] sm:$0xf0]  ;;  %v1341_v42 = vor.u32 %v1763_v34, %v1340_v33 }
   0xb   :  { %773 = vmatpush.bf16.msra.mxu3 %v1429_v35  ;;  %v1268_v43 = vld [vmem:[%s2725_s1 + $0xb0] sm:$0xf]  ;;  %v1745_v44 = vld [vmem:[%s2725_s1 + $0xb4] sm:$0xf0]  ;;  %v1421_v46 = vor.u32 %v1783_v40, %v1420_v36  ;;  %v1205_v50 = vor.u32 %v1729_v39, %v1204_v38  ;;  %v1196_v51 = vld [vmem:[%s2725_s1 + $0x20] sm:$0xf] }
   0xc   :  { %736 = vmatpush.bf16.msra.mxu0 %v1221_v24  ;;  %v1332_v45 = vld [vmem:[%s2725_s1 + $0x130] sm:$0xf]  ;;  %v1761_v47 = vld [vmem:[%s2725_s1 + $0x134] sm:$0xf0]  ;;  %v1727_v52 = vld [vmem:[%s2725_s1 + $0x24] sm:$0xf0]  ;;  %v1269_v54 = vor.u32 %v1745_v44, %v1268_v43 }
   0xd   :  { %749 = vmatpush.bf16.msra.mxu1 %v1285_v27  ;;  %v1412_v48 = vld [vmem:[%s2725_s1 + $0x1d0] sm:$0xf]  ;;  %v1781_v49 = vld [vmem:[%s2725_s1 + $0x1d4] sm:$0xf0]  ;;  %v1333_v55 = vor.u32 %v1761_v47, %v1332_v45  ;;  %v1260_v56 = vld [vmem:[%s2725_s1 + $0xa0] sm:$0xf]  ;;  %v1197_v62 = vor.u32 %v1727_v52, %v1196_v51 }
   0xe   :  { %762 = vmatpush.bf16.msra.mxu2 %v1349_v28  ;;  %v1413_v53 = vor.u32 %v1781_v49, %v1412_v48  ;;  %v1404_v57 = vld [vmem:[%s2725_s1 + $0x1c0] sm:$0xf]  ;;  %v1779_v58 = vld [vmem:[%s2725_s1 + $0x1c4] sm:$0xf0]  ;;  %v1188_v63 = vld [vmem:[%s2725_s1 + $0x10] sm:$0xf] }
   0xf   :  { %774 = vmatpush.bf16.msra.mxu3 %v1421_v46  ;;  %v1743_v59 = vld [vmem:[%s2725_s1 + $0xa4] sm:$0xf0]  ;;  %v1324_v60 = vld [vmem:[%s2725_s1 + $0x120] sm:$0xf]  ;;  %v1725_v0 = vld [vmem:[%s2725_s1 + $0x14] sm:$0xf0]  ;;  %v1405_v1 = vor.u32 %v1779_v58, %v1404_v57 }
  0x10   :  { %737 = vmatpush.bf16.msra.mxu0 %v1213_v37  ;;  %v1759_v61 = vld [vmem:[%s2725_s1 + $0x124] sm:$0xf0]  ;;  %v1261_v2 = vor.u32 %v1743_v59, %v1260_v56  ;;  %v1252_v4 = vld [vmem:[%s2725_s1 + $0x90] sm:$0xf]  ;;  %v1777_v6 = vld [vmem:[%s2725_s1 + $0x1b4] sm:$0xf0]  ;;  %v1189_v10 = vor.u32 %v1725_v0, %v1188_v63 }
  0x11   :  { %750 = vmatpush.bf16.msra.mxu1 %v1277_v41  ;;  %v1325_v3 = vor.u32 %v1759_v61, %v1324_v60  ;;  %v1396_v5 = vld [vmem:[%s2725_s1 + $0x1b0] sm:$0xf]  ;;  %v1741_v7 = vld [vmem:[%s2725_s1 + $0x94] sm:$0xf0]  ;;  %v1180_v11 = vld [vmem:[%s2725_s1] sm:$0xf] }
  0x12   :  { %763 = vmatpush.bf16.msra.mxu2 %v1341_v42  ;;  %v1316_v8 = vld [vmem:[%s2725_s1 + $0x110] sm:$0xf]  ;;  %v1757_v9 = vld [vmem:[%s2725_s1 + $0x114] sm:$0xf0]  ;;  %v1723_v12 = vld [vmem:[%s2725_s1 + $0x4] sm:$0xf0]  ;;  %v1397_v14 = vor.u32 %v1777_v6, %v1396_v5  ;;  %v1253_v15 = vor.u32 %v1741_v7, %v1252_v4 }
  0x13   :  { %775 = vmatpush.bf16.msra.mxu3 %v1413_v53  ;;  %v1244_v13 = vld [vmem:[%s2725_s1 + $0x80] sm:$0xf]  ;;  %v1317_v16 = vor.u32 %v1757_v9, %v1316_v8  ;;  %v1739_v17 = vld [vmem:[%s2725_s1 + $0x84] sm:$0xf0]  ;;  %v1492_v22 = vld [vmem:[%s2725_s1 + $0x270] sm:$0xf]  ;;  %v1181_v26 = vor.u32 %v1723_v12, %v1180_v11 }
  0x14   :  { %738 = vmatpush.bf16.msra.mxu0 %v1205_v50  ;;  %v1388_v18 = vld [vmem:[%s2725_s1 + $0x1a0] sm:$0xf]  ;;  %v1775_v19 = vld [vmem:[%s2725_s1 + $0x1a4] sm:$0xf0]  ;;  %v1801_v23 = vld [vmem:[%s2725_s1 + $0x274] sm:$0xf0]  ;;  %v1245_v30 = vor.u32 %v1739_v17, %v1244_v13 }
  0x15   :  { %751 = vmatpush.bf16.msra.mxu1 %v1269_v54  ;;  %v1308_v20 = vld [vmem:[%s2725_s1 + $0x100] sm:$0xf]  ;;  %v1755_v21 = vld [vmem:[%s2725_s1 + $0x104] sm:$0xf0]  ;;  %v1556_v24 = vld [vmem:[%s2725_s1 + $0x2f0] sm:$0xf]  ;;  %v1389_v29 = vor.u32 %v1775_v19, %v1388_v18  ;;  %v1493_v34 = vor.u32 %v1801_v23, %v1492_v22 }
  0x16   :  { %764 = vmatpush.bf16.msra.mxu2 %v1333_v55  ;;  %v1817_v25 = vld [vmem:[%s2725_s1 + $0x2f4] sm:$0xf0]  ;;  %v1620_v27 = vld [vmem:[%s2725_s1 + $0x370] sm:$0xf]  ;;  %v1309_v31 = vor.u32 %v1755_v21, %v1308_v20  ;;  %v1484_v36 = vld [vmem:[%s2725_s1 + $0x260] sm:$0xf] }
  0x17   :  { %776 = vmatpush.bf16.msra.mxu3 %v1405_v1  ;;  %v1833_v28 = vld [vmem:[%s2725_s1 + $0x374] sm:$0xf0]  ;;  %v1380_v32 = vld [vmem:[%s2725_s1 + $0x190] sm:$0xf]  ;;  %v1557_v35 = vor.u32 %v1817_v25, %v1556_v24  ;;  %v1799_v37 = vld [vmem:[%s2725_s1 + $0x264] sm:$0xf0] }
  0x18   :  { %739 = vmatpush.bf16.msra.mxu0 %v1197_v62  ;;  %v1773_v33 = vld [vmem:[%s2725_s1 + $0x194] sm:$0xf0]  ;;  %v1621_v38 = vor.u32 %v1833_v28, %v1620_v27  ;;  %v1548_v39 = vld [vmem:[%s2725_s1 + $0x2e0] sm:$0xf]  ;;  %v1815_v40 = vld [vmem:[%s2725_s1 + $0x2e4] sm:$0xf0]  ;;  %v1485_v46 = vor.u32 %v1799_v37, %v1484_v36 }
  0x19   :  { %752 = vmatpush.bf16.msra.mxu1 %v1261_v2  ;;  %v28_v41 = vld [vmem:[%s2724_s0 + $0x8] sm:$0xff]  ;;  %v1612_v42 = vld [vmem:[%s2725_s1 + $0x360] sm:$0xf]  ;;  %v1381_v44 = vor.u32 %v1773_v33, %v1380_v32  ;;  %v1549_v50 = vor.u32 %v1815_v40, %v1548_v39  ;;  %v1476_v51 = vld [vmem:[%s2725_s1 + $0x250] sm:$0xf] }
  0x1a   :  { %765 = vmatpush.bf16.msra.mxu2 %v1325_v3  ;;  %v1831_v43 = vld [vmem:[%s2725_s1 + $0x364] sm:$0xf0]  ;;  %v155_v45 = vunpack.c.l.b16 %v28_v41  ;;  %v1372_v47 = vld [vmem:[%s2725_s1 + $0x180] sm:$0xf]  ;;  %v1736_v52 = vld [vmem:[%s2725_s1 + $0x74] sm:$0xf]  ;;  %v156_v61 = vunpack.c.h.b16 %v28_v41 }
  0x1b   :  { %777 = vmatpush.bf16.msra.mxu3 %v1397_v14  ;;  %v1771_v48 = vld [vmem:[%s2725_s1 + $0x184] sm:$0xf0]  ;;  %v27_v49 = vld [vmem:[%s2724_s0] sm:$0xff]  ;;  %v1238_v53 = vld [vmem:[%s2725_s1 + $0x78] sm:$0xf0]  ;;  %v1613_v57 = vor.u32 %v1831_v43, %v1612_v42 }
  0x1c   :  { %740 = vmatpush.bf16.msra.mxu0 %v1189_v10  ;;  %v2171_v54 = vpack.c.b16 %v155_v45, %v155_v45  ;;  %v153_v55 = vunpack.c.l.b16 %v27_v49  ;;  %v154_v56 = vunpack.c.h.b16 %v27_v49  ;;  %v1797_v58 = vld [vmem:[%s2725_s1 + $0x254] sm:$0xf0]  ;;  %v1540_v59 = vld [vmem:[%s2725_s1 + $0x2d0] sm:$0xf]  ;;  %v1373_v0 = vor.u32 %v1771_v48, %v1372_v47  ;;  %v1468_v6 = vld [vmem:[%s2725_s1 + $0x240] sm:$0xf] }
  0x1d   :  { %753 = vmatpush.bf16.msra.mxu1 %v1253_v15  ;;  %v1813_v60 = vld [vmem:[%s2725_s1 + $0x2d4] sm:$0xf0]  ;;  %v1604_v62 = vld [vmem:[%s2725_s1 + $0x350] sm:$0xf]  ;;  %v1241_v3 = vor.u32 %v1736_v52, %v1238_v53  ;;  %v1477_v4 = vor.u32 %v1797_v58, %v1476_v51  ;;  %v1734_v7 = vld [vmem:[%s2725_s1 + $0x64] sm:$0xf]  ;;  %v2212_v13 = vpack.c.b16 %v156_v61, %v156_v61 }
  0x1e   :  { %766 = vmatpush.bf16.msra.mxu2 %v1317_v16  ;;  %v1829_v63 = vld [vmem:[%s2725_s1 + $0x354] sm:$0xf0]  ;;  %v2189_v1 = vpack.c.b16 %v153_v55, %v153_v55  ;;  %v2191_v2 = vpack.c.b16 %v154_v56, %v154_v56  ;;  %v1541_v5 = vor.u32 %v1813_v60, %v1540_v59  ;;  %v1230_v8 = vld [vmem:[%s2725_s1 + $0x68] sm:$0xf0]  ;;  %v1795_v10 = vld [vmem:[%s2725_s1 + $0x244] sm:$0xf0] }
  0x1f   :  { %778 = vmatpush.bf16.msra.mxu3 %v1389_v29  ;;  %v1605_v9 = vor.u32 %v1829_v63, %v1604_v62  ;;  %v1532_v11 = vld [vmem:[%s2725_s1 + $0x2c0] sm:$0xf]  ;;  %v1811_v12 = vld [vmem:[%s2725_s1 + $0x2c4] sm:$0xf0]  ;;  %v1233_v16 = vor.u32 %v1734_v7, %v1230_v8  ;;  %v1469_v17 = vor.u32 %v1795_v10, %v1468_v6  ;;  %v1460_v19 = vld [vmem:[%s2725_s1 + $0x230] sm:$0xf] }
  0x20   :  { %741 = vmatpush.bf16.msra.mxu0 %v1181_v26  ;;  %v1596_v14 = vld [vmem:[%s2725_s1 + $0x340] sm:$0xf]  ;;  %v1827_v15 = vld [vmem:[%s2725_s1 + $0x344] sm:$0xf0]  ;;  %v1533_v18 = vor.u32 %v1811_v12, %v1532_v11  ;;  %v1732_v20 = vld [vmem:[%s2725_s1 + $0x54] sm:$0xf] }
  0x21   :  { %754 = vmatpush.bf16.msra.mxu1 %v1245_v30  ;;  %v1222_v21 = vld [vmem:[%s2725_s1 + $0x58] sm:$0xf0]  ;;  %v1597_v22 = vor.u32 %v1827_v15, %v1596_v14  ;;  %v1793_v23 = vld [vmem:[%s2725_s1 + $0x234] sm:$0xf0]  ;;  %v1524_v24 = vld [vmem:[%s2725_s1 + $0x2b0] sm:$0xf] }
  0x22   :  { %767 = vmatpush.bf16.msra.mxu2 %v1309_v31  ;;  %v1809_v25 = vld [vmem:[%s2725_s1 + $0x2b4] sm:$0xf0]  ;;  %v1588_v26 = vld [vmem:[%s2725_s1 + $0x330] sm:$0xf]  ;;  %v1225_v28 = vor.u32 %v1732_v20, %v1222_v21  ;;  %v1461_v29 = vor.u32 %v1793_v23, %v1460_v19  ;;  %v1452_v31 = vld [vmem:[%s2725_s1 + $0x220] sm:$0xf] }
  0x23   :  { %779 = vmatpush.bf16.msra.mxu3 %v1381_v44  ;;  %742 = vmatmul.bf16.vlgmr.msra.gmra.mxu0 %v2189_v1  ;;  %v1825_v27 = vld [vmem:[%s2725_s1 + $0x334] sm:$0xf0]  ;;  %v1525_v30 = vor.u32 %v1809_v25, %v1524_v24  ;;  %v1730_v32 = vld [vmem:[%s2725_s1 + $0x44] sm:$0xf]  ;;  %v1214_v33 = vld [vmem:[%s2725_s1 + $0x48] sm:$0xf0] }
  0x24   :  { %786 = vmatpush.bf16.msrb.mxu0 %v1493_v34  ;;  %755 = vmatmul.bf16.vlgmr.msra.gmra.mxu1 %v2191_v2  ;;  %v1589_v34 = vor.u32 %v1825_v27, %v1588_v26  ;;  %v1516_v36 = vld [vmem:[%s2725_s1 + $0x2a0] sm:$0xf]  ;;  %v1807_v37 = vld [vmem:[%s2725_s1 + $0x2a4] sm:$0xf0]  ;;  %v1217_v40 = vor.u32 %v1730_v32, %v1214_v33  ;;  %v1444_v43 = vld [vmem:[%s2725_s1 + $0x210] sm:$0xf] }
  0x25   :  { %799 = vmatpush.bf16.msrb.mxu1 %v1557_v35  ;;  %768 = vmatmul.bf16.vlgmr.msra.gmra.mxu2 %v2171_v54  ;;  %v1791_v35 = vld [vmem:[%s2725_s1 + $0x224] sm:$0xf0]  ;;  %v1517_v42 = vor.u32 %v1807_v37, %v1516_v36  ;;  %v1728_v44 = vld [vmem:[%s2725_s1 + $0x34] sm:$0xf]  ;;  %v1206_v45 = vld [vmem:[%s2725_s1 + $0x38] sm:$0xf0] }
  0x26   :  { %812 = vmatpush.bf16.msrb.mxu2 %v1621_v38  ;;  %v1580_v38 = vld [vmem:[%s2725_s1 + $0x320] sm:$0xf]  ;;  %v1823_v39 = vld [vmem:[%s2725_s1 + $0x324] sm:$0xf0]  ;;  %v1453_v41 = vor.u32 %v1791_v35, %v1452_v31  ;;  %v1789_v47 = vld [vmem:[%s2725_s1 + $0x214] sm:$0xf0] }
  0x27   :  { %780 = vmatpush.bf16.msra.mxu3 %v1373_v0  ;;  %v1508_v48 = vld [vmem:[%s2725_s1 + $0x290] sm:$0xf]  ;;  %v1805_v49 = vld [vmem:[%s2725_s1 + $0x294] sm:$0xf0]  ;;  %v1436_v52 = vld [vmem:[%s2725_s1 + $0x200] sm:$0xf]  ;;  %v1445_v58 = vor.u32 %v1789_v47, %v1444_v43 }
  0x28   :  { %787 = vmatpush.bf16.msrb.mxu0 %v1485_v46  ;;  %v1581_v46 = vor.u32 %v1823_v39, %v1580_v38  ;;  %v1821_v51 = vld [vmem:[%s2725_s1 + $0x314] sm:$0xf0]  ;;  %v1787_v53 = vld [vmem:[%s2725_s1 + $0x204] sm:$0xf0]  ;;  %v1500_v55 = vld [vmem:[%s2725_s1 + $0x280] sm:$0xf]  ;;  %v1509_v59 = vor.u32 %v1805_v49, %v1508_v48 }
  0x29   :  { %800 = vmatpush.bf16.msrb.mxu1 %v1549_v50  ;;  %v1572_v50 = vld [vmem:[%s2725_s1 + $0x310] sm:$0xf]  ;;  %v1803_v56 = vld [vmem:[%s2725_s1 + $0x284] sm:$0xf0]  ;;  %v1726_v61 = vld [vmem:[%s2725_s1 + $0x24] sm:$0xf]  ;;  %v1437_v15 = vor.u32 %v1787_v53, %v1436_v52 }
  0x2a   :  { %813 = vmatpush.bf16.msrb.mxu2 %v1613_v57  ;;  %781 = vmatmul.bf16.vlgmr.msra.gmra.mxu3 %v2212_v13  ;;  %v1209_v57 = vor.u32 %v1728_v44, %v1206_v45  ;;  %v29_v60 = vld [vmem:[%s2724_s0 + $0x10] sm:$0xff]  ;;  %v1198_v62 = vld [vmem:[%s2725_s1 + $0x28] sm:$0xf0]  ;;  %v1573_v63 = vor.u32 %v1821_v51, %v1572_v50  ;;  %v1564_v0 = vld [vmem:[%s2725_s1 + $0x300] sm:$0xf] }
  0x2b   :  { %825 = vmatpush.bf16.msrb.mxu3 %v1241_v3  ;;  %v1819_v3 = vld [vmem:[%s2725_s1 + $0x304] sm:$0xf0]  ;;  %v1302_v6 = vld [vmem:[%s2725_s1 + $0xf8] sm:$0xf0]  ;;  %v1768_v7 = vld [vmem:[%s2725_s1 + $0x174] sm:$0xf]  ;;  %v1201_v10 = vor.u32 %v1726_v61, %v1198_v62  ;;  %v158_v11 = vunpack.c.h.b16 %v29_v60 }
  0x2c   :  { %788 = vmatpush.bf16.msrb.mxu0 %v1477_v4  ;;  %v30_v4 = vld [vmem:[%s2724_s0 + $0x18] sm:$0xf]  ;;  %v1366_v8 = vld [vmem:[%s2725_s1 + $0x178] sm:$0xf0]  ;;  %v1784_v12 = vld [vmem:[%s2725_s1 + $0x1f4] sm:$0xf] }
  0x2d   :  { %801 = vmatpush.bf16.msrb.mxu1 %v1541_v5  ;;  %v1752_v5 = vld [vmem:[%s2725_s1 + $0xf4] sm:$0xf]  ;;  %v1430_v14 = vld [vmem:[%s2725_s1 + $0x1f8] sm:$0xf0]  ;;  %v1750_v23 = vld [vmem:[%s2725_s1 + $0xe4] sm:$0xf] }
  0x2e   :  { %814 = vmatpush.bf16.msrb.mxu2 %v1605_v9  ;;  %v157_v9 = vunpack.c.l.b16 %v29_v60  ;;  %v1305_v19 = vor.u32 %v1752_v5, %v1302_v6  ;;  %v1724_v20 = vld [vmem:[%s2725_s1 + $0x14] sm:$0xf]  ;;  %v1190_v21 = vld [vmem:[%s2725_s1 + $0x18] sm:$0xf0]  ;;  %v1294_v24 = vld [vmem:[%s2725_s1 + $0xe8] sm:$0xf0]  ;;  %v1433_v26 = vor.u32 %v1784_v12, %v1430_v14 }
  0x2f   :  { %826 = vmatpush.bf16.msrb.mxu3 %v1233_v16  ;;  %v1501_v16 = vor.u32 %v1803_v56, %v1500_v55  ;;  %v1766_v25 = vld [vmem:[%s2725_s1 + $0x164] sm:$0xf]  ;;  %v1422_v31 = vld [vmem:[%s2725_s1 + $0x1e8] sm:$0xf0]  ;;  %v1193_v33 = vor.u32 %v1724_v20, %v1190_v21  ;;  %v1297_v35 = vor.u32 %v1750_v23, %v1294_v24  ;;  %v1286_v36 = vld [vmem:[%s2725_s1 + $0xd8] sm:$0xf0] }
  0x30   :  { %789 = vmatpush.bf16.msrb.mxu0 %v1469_v17  ;;  %v159_v17 = vunpack.c.l.b16 %v30_v4  ;;  %v2357_v27 = vpack.c.b16 %v157_v9, %v157_v9  ;;  %v1722_v37 = vld [vmem:[%s2725_s1 + $0x4] sm:$0xf]  ;;  %v1182_v38 = vld [vmem:[%s2725_s1 + $0x8] sm:$0xf0]  ;;  %v1350_v44 = vld [vmem:[%s2725_s1 + $0x158] sm:$0xf0] }
  0x31   :  { %802 = vmatpush.bf16.msrb.mxu1 %v1533_v18  ;;  %v1565_v18 = vor.u32 %v1819_v3, %v1564_v0  ;;  %v1780_v45 = vld [vmem:[%s2725_s1 + $0x1d4] sm:$0xf]  ;;  %v1185_v47 = vor.u32 %v1722_v37, %v1182_v38  ;;  %v1746_v49 = vld [vmem:[%s2725_s1 + $0xc4] sm:$0xf]  ;;  %v1278_v50 = vld [vmem:[%s2725_s1 + $0xc8] sm:$0xf0] }
  0x32   :  { %815 = vmatpush.bf16.msrb.mxu2 %v1597_v22  ;;  %v1369_v22 = vor.u32 %v1768_v7, %v1366_v8  ;;  %v2370_v32 = vpack.c.b16 %v159_v17, %v159_v17  ;;  %v1762_v53 = vld [vmem:[%s2725_s1 + $0x144] sm:$0xf]  ;;  %v1486_v56 = vld [vmem:[%s2725_s1 + $0x268] sm:$0xf0]  ;;  %v1744_v61 = vld [vmem:[%s2725_s1 + $0xb4] sm:$0xf] }
  0x33   :  { %827 = vmatpush.bf16.msrb.mxu3 %v1225_v28  ;;  %v1358_v28 = vld [vmem:[%s2725_s1 + $0x168] sm:$0xf0]  ;;  %v1798_v55 = vld [vmem:[%s2725_s1 + $0x264] sm:$0xf]  ;;  %v1270_v62 = vld [vmem:[%s2725_s1 + $0xb8] sm:$0xf0] }
  0x34   :  { %790 = vmatpush.bf16.msrb.mxu0 %v1461_v29  ;;  %v2362_v29 = vpack.c.b16 %v158_v11, %v158_v11  ;;  %v1361_v39 = vor.u32 %v1766_v25, %v1358_v28  ;;  %v1406_v60 = vld [vmem:[%s2725_s1 + $0x1c8] sm:$0xf0]  ;;  %v1760_v0 = vld [vmem:[%s2725_s1 + $0x134] sm:$0xf]  ;;  %v1489_v3 = vor.u32 %v1798_v55, %v1486_v56  ;;  %v1478_v6 = vld [vmem:[%s2725_s1 + $0x258] sm:$0xf0] }
  0x35   :  { %803 = vmatpush.bf16.msrb.mxu1 %v1525_v30  ;;  %v1782_v30 = vld [vmem:[%s2725_s1 + $0x1e4] sm:$0xf]  ;;  %v1796_v4 = vld [vmem:[%s2725_s1 + $0x254] sm:$0xf] }
  0x36   :  { %816 = vmatpush.bf16.msrb.mxu2 %v1589_v34  ;;  %v1748_v34 = vld [vmem:[%s2725_s1 + $0xd4] sm:$0xf]  ;;  %v1425_v43 = vor.u32 %v1782_v30, %v1422_v31 }
  0x37   :  { %828 = vmatpush.bf16.msrb.mxu3 %v1217_v40  ;;  %v1764_v40 = vld [vmem:[%s2725_s1 + $0x154] sm:$0xf]  ;;  %v1289_v48 = vor.u32 %v1748_v34, %v1286_v36 }
  0x38   :  { %791 = vmatpush.bf16.msrb.mxu0 %v1453_v41  ;;  %v1800_v41 = vld [vmem:[%s2725_s1 + $0x274] sm:$0xf]  ;;  %v1353_v52 = vor.u32 %v1764_v40, %v1350_v44 }
  0x39   :  { %804 = vmatpush.bf16.msrb.mxu1 %v1517_v42  ;;  %v1494_v42 = vld [vmem:[%s2725_s1 + $0x278] sm:$0xf0] }
  0x3a   :  { %817 = vmatpush.bf16.msrb.mxu2 %v1581_v46  ;;  %v1414_v46 = vld [vmem:[%s2725_s1 + $0x1d8] sm:$0xf0]  ;;  %v1497_v51 = vor.u32 %v1800_v41, %v1494_v42 }
  0x3b   :  { %829 = vmatpush.bf16.msrb.mxu3 %v1209_v57  ;;  %v1417_v57 = vor.u32 %v1780_v45, %v1414_v46 }
  0x3c   :  { %792 = vmatpush.bf16.msrb.mxu0 %v1445_v58  ;;  %v1342_v58 = vld [vmem:[%s2725_s1 + $0x148] sm:$0xf0] }
  0x3d   :  { %805 = vmatpush.bf16.msrb.mxu1 %v1509_v59  ;;  %v1778_v59 = vld [vmem:[%s2725_s1 + $0x1c4] sm:$0xf]  ;;  %v1345_v5 = vor.u32 %v1762_v53, %v1342_v58 }
  0x3e   :  { %818 = vmatpush.bf16.msrb.mxu2 %v1573_v63  ;;  %v1281_v63 = vor.u32 %v1746_v49, %v1278_v50  ;;  %v1409_v7 = vor.u32 %v1778_v59, %v1406_v60 }
  0x3f   :  { %830 = vmatpush.bf16.msrb.mxu3 %v1201_v10 }
  0x40   :  { %793 = vmatpush.bf16.msrb.mxu0 %v1437_v15 }
  0x41   :  { %806 = vmatpush.bf16.msrb.mxu1 %v1501_v16 }
  0x42   :  { %819 = vmatpush.bf16.msrb.mxu2 %v1565_v18 }
  0x43   :  { %794 = vmatmul.bf16.vlgmr.msrb.gmra.mxu0 %v2357_v27  ;;  %831 = vmatpush.bf16.msrb.mxu3 %v1193_v33 }
  0x44   :  { %838 = vmatpush.bf16.msra.mxu0 %v1305_v19  ;;  %807 = vmatmul.bf16.vlgmr.msrb.gmra.mxu1 %v2362_v29 }
  0x45   :  { %851 = vmatpush.bf16.msra.mxu1 %v1369_v22  ;;  %820 = vmatmul.bf16.vlgmr.msrb.gmra.mxu2 %v2370_v32 }
  0x46   :  { %864 = vmatpush.bf16.msra.mxu2 %v1433_v26 }
  0x47   :  { %832 = vmatpush.bf16.msrb.mxu3 %v1185_v47 }
  0x48   :  { %839 = vmatpush.bf16.msra.mxu0 %v1297_v35 }
  0x49   :  { %852 = vmatpush.bf16.msra.mxu1 %v1361_v39 }
  0x4a   :  { %865 = vmatpush.bf16.msra.mxu2 %v1425_v43 }
  0x4b   :  { %877 = vmatpush.bf16.msra.mxu3 %v1497_v51 }
  0x4c   :  { %840 = vmatpush.bf16.msra.mxu0 %v1289_v48 }
  0x4d   :  { %853 = vmatpush.bf16.msra.mxu1 %v1353_v52 }
  0x4e   :  { %866 = vmatpush.bf16.msra.mxu2 %v1417_v57 }
  0x4f   :  { %12 = vsyncpa [#allocation3], 0  ;;  %v1334_v8 = vld [vmem:[%s2725_s1 + $0x138] sm:$0xf0]  ;;  %v1776_v9 = vld [vmem:[%s2725_s1 + $0x1b4] sm:$0xf]  ;;  %833 = vmatmul.bf16.vlgmr.msrb.gmra.mxu3 %v2189_v1  ;;  %v1273_v11 = vor.u32 %v1744_v61, %v1270_v62  ;;  %v1481_v15 = vor.u32 %v1796_v4, %v1478_v6 }
  0x50   :  { %v1398_v10 = vld [vmem:[%s2725_s1 + $0x1b8] sm:$0xf0]  ;;  %841 = vmatpush.bf16.msra.mxu0 %v1281_v63  ;;  %878 = vmatpush.bf16.msra.mxu3 %v1489_v3  ;;  %v1742_v12 = vld [vmem:[%s2725_s1 + $0xa4] sm:$0xf]  ;;  %v1262_v14 = vld [vmem:[%s2725_s1 + $0xa8] sm:$0xf0]  ;;  %v1337_v16 = vor.u32 %v1760_v0, %v1334_v8 }
  0x51   :  { %854 = vmatpush.bf16.msra.mxu1 %v1345_v5  ;;  %v1758_v17 = vld [vmem:[%s2725_s1 + $0x124] sm:$0xf]  ;;  %v1470_v18 = vld [vmem:[%s2725_s1 + $0x248] sm:$0xf0]  ;;  %v1401_v19 = vor.u32 %v1776_v9, %v1398_v10  ;;  %v1265_v23 = vor.u32 %v1742_v12, %v1262_v14  ;;  %v1740_v24 = vld [vmem:[%s2725_s1 + $0x94] sm:$0xf] }
  0x52   :  { %867 = vmatpush.bf16.msra.mxu2 %v1409_v7  ;;  %v1794_v1 = vld [vmem:[%s2725_s1 + $0x244] sm:$0xf]  ;;  %v1326_v20 = vld [vmem:[%s2725_s1 + $0x128] sm:$0xf0]  ;;  %v1254_v25 = vld [vmem:[%s2725_s1 + $0x98] sm:$0xf0] }
  0x53   :  { %v1774_v21 = vld [vmem:[%s2725_s1 + $0x1a4] sm:$0xf]  ;;  %v1390_v22 = vld [vmem:[%s2725_s1 + $0x1a8] sm:$0xf0]  ;;  %v1473_v26 = vor.u32 %v1794_v1, %v1470_v18  ;;  %v1329_v28 = vor.u32 %v1758_v17, %v1326_v20  ;;  %v1756_v30 = vld [vmem:[%s2725_s1 + $0x114] sm:$0xf]  ;;  %v1257_v38 = vor.u32 %v1740_v24, %v1254_v25 }
  0x54   :  { %842 = vmatpush.bf16.msra.mxu0 %v1273_v11  ;;  %879 = vmatpush.bf16.msra.mxu3 %v1481_v15  ;;  %v1792_v31 = vld [vmem:[%s2725_s1 + $0x234] sm:$0xf]  ;;  %v1462_v33 = vld [vmem:[%s2725_s1 + $0x238] sm:$0xf0]  ;;  %v1393_v34 = vor.u32 %v1774_v21, %v1390_v22  ;;  %v1738_v39 = vld [vmem:[%s2725_s1 + $0x84] sm:$0xf] }
  0x55   :  { %855 = vmatpush.bf16.msra.mxu1 %v1337_v16  ;;  %v1318_v35 = vld [vmem:[%s2725_s1 + $0x118] sm:$0xf0]  ;;  %v1772_v36 = vld [vmem:[%s2725_s1 + $0x194] sm:$0xf]  ;;  %v1246_v40 = vld [vmem:[%s2725_s1 + $0x88] sm:$0xf0]  ;;  %v1465_v42 = vor.u32 %v1792_v31, %v1462_v33 }
  0x56   :  { %868 = vmatpush.bf16.msra.mxu2 %v1401_v19  ;;  %v1382_v37 = vld [vmem:[%s2725_s1 + $0x198] sm:$0xf0]  ;;  %v1754_v41 = vld [vmem:[%s2725_s1 + $0x104] sm:$0xf]  ;;  %v1321_v43 = vor.u32 %v1756_v30, %v1318_v35  ;;  %v1310_v44 = vld [vmem:[%s2725_s1 + $0x108] sm:$0xf0]  ;;  %v1249_v55 = vor.u32 %v1738_v39, %v1246_v40 }
  0x57   :  { %v1790_v45 = vld [vmem:[%s2725_s1 + $0x224] sm:$0xf]  ;;  %v1454_v46 = vld [vmem:[%s2725_s1 + $0x228] sm:$0xf0]  ;;  %v1385_v47 = vor.u32 %v1772_v36, %v1382_v37  ;;  %v1816_v48 = vld [vmem:[%s2725_s1 + $0x2f4] sm:$0xf]  ;;  %v1313_v57 = vor.u32 %v1754_v41, %v1310_v44 }
  0x58   :  { %843 = vmatpush.bf16.msra.mxu0 %v1265_v23  ;;  %880 = vmatpush.bf16.msra.mxu3 %v1473_v26  ;;  %v1558_v49 = vld [vmem:[%s2725_s1 + $0x2f8] sm:$0xf0]  ;;  %v1832_v50 = vld [vmem:[%s2725_s1 + $0x374] sm:$0xf]  ;;  %v1770_v52 = vld [vmem:[%s2725_s1 + $0x184] sm:$0xf]  ;;  %v1457_v56 = vor.u32 %v1790_v45, %v1454_v46 }
  0x59   :  { %856 = vmatpush.bf16.msra.mxu1 %v1329_v28  ;;  %v1622_v51 = vld [vmem:[%s2725_s1 + $0x378] sm:$0xf0]  ;;  %v1374_v53 = vld [vmem:[%s2725_s1 + $0x188] sm:$0xf0]  ;;  %v1561_v58 = vor.u32 %v1816_v48, %v1558_v49  ;;  %v1788_v59 = vld [vmem:[%s2725_s1 + $0x214] sm:$0xf] }
  0x5a   :  { %869 = vmatpush.bf16.msra.mxu2 %v1393_v34  ;;  %v1446_v60 = vld [vmem:[%s2725_s1 + $0x218] sm:$0xf0]  ;;  %v1625_v61 = vor.u32 %v1832_v50, %v1622_v51  ;;  %v1814_v62 = vld [vmem:[%s2725_s1 + $0x2e4] sm:$0xf]  ;;  %v1550_v63 = vld [vmem:[%s2725_s1 + $0x2e8] sm:$0xf0]  ;;  %v1377_v0 = vor.u32 %v1770_v52, %v1374_v53 }
  0x5b   :  { %v1830_v3 = vld [vmem:[%s2725_s1 + $0x364] sm:$0xf]  ;;  %v1614_v4 = vld [vmem:[%s2725_s1 + $0x368] sm:$0xf0]  ;;  %v1449_v5 = vor.u32 %v1788_v59, %v1446_v60  ;;  %v1553_v6 = vor.u32 %v1814_v62, %v1550_v63  ;;  %v1841_v9 = vld [vmem:[%s2727_s3 + $0x38] sm:$0xff]  ;;  %s1887_s12 = smov [#allocation2]  }
  0x5c   :  { %844 = vmatpush.bf16.msra.mxu0 %v1257_v38  ;;  %881 = vmatpush.bf16.msra.mxu3 %v1465_v42  ;;  %v1786_v7 = vld [vmem:[%s2725_s1 + $0x204] sm:$0xf]  ;;  %v1438_v8 = vld [vmem:[%s2725_s1 + $0x208] sm:$0xf0]  ;;  %v1617_v10 = vor.u32 %v1830_v3, %v1614_v4  ;;  %v1812_v11 = vld [vmem:[%s2725_s1 + $0x2d4] sm:$0xf] }
  0x5d   :  { %857 = vmatpush.bf16.msra.mxu1 %v1321_v43  ;;  %v1542_v12 = vld [vmem:[%s2725_s1 + $0x2d8] sm:$0xf0]  ;;  %v1828_v14 = vld [vmem:[%s2725_s1 + $0x354] sm:$0xf]  ;;  %v1441_v16 = vor.u32 %v1786_v7, %v1438_v8  ;;  %v1534_v18 = vld [vmem:[%s2725_s1 + $0x2c8] sm:$0xf0] }
  0x5e   :  { %870 = vmatpush.bf16.msra.mxu2 %v1385_v47  ;;  %v1606_v15 = vld [vmem:[%s2725_s1 + $0x358] sm:$0xf0]  ;;  %v1545_v17 = vor.u32 %v1812_v11, %v1542_v12  ;;  %v1826_v19 = vld [vmem:[%s2725_s1 + $0x344] sm:$0xf]  ;;  %v1808_v21 = vld [vmem:[%s2725_s1 + $0x2b4] sm:$0xf] }
  0x5f   :  { %v1609_v1 = vor.u32 %v1828_v14, %v1606_v15  ;;  %v1526_v22 = vld [vmem:[%s2725_s1 + $0x2b8] sm:$0xf0]  ;;  %v1824_v23 = vld [vmem:[%s2725_s1 + $0x334] sm:$0xf]  ;;  %v1806_v28 = vld [vmem:[%s2725_s1 + $0x2a4] sm:$0xf] }
  0x60   :  { %845 = vmatpush.bf16.msra.mxu0 %v1249_v55  ;;  %882 = vmatpush.bf16.msra.mxu3 %v1457_v56  ;;  %v1590_v24 = vld [vmem:[%s2725_s1 + $0x338] sm:$0xf0]  ;;  %v1529_v25 = vor.u32 %v1808_v21, %v1526_v22  ;;  %v1822_v30 = vld [vmem:[%s2725_s1 + $0x324] sm:$0xf]  ;;  %v1582_v31 = vld [vmem:[%s2725_s1 + $0x328] sm:$0xf0] }
  0x61   :  { %858 = vmatpush.bf16.msra.mxu1 %v1313_v57  ;;  %v1593_v26 = vor.u32 %v1824_v23, %v1590_v24  ;;  %v1585_v34 = vor.u32 %v1822_v30, %v1582_v31  ;;  %v1804_v35 = vld [vmem:[%s2725_s1 + $0x294] sm:$0xf]  ;;  %v1510_v36 = vld [vmem:[%s2725_s1 + $0x298] sm:$0xf0]  ;;  %v1802_v41 = vld [vmem:[%s2725_s1 + $0x284] sm:$0xf] }
  0x62   :  { %871 = vmatpush.bf16.msra.mxu2 %v1377_v0  ;;  %v1820_v37 = vld [vmem:[%s2725_s1 + $0x314] sm:$0xf]  ;;  %v1574_v38 = vld [vmem:[%s2725_s1 + $0x318] sm:$0xf0]  ;;  %v1513_v39 = vor.u32 %v1804_v35, %v1510_v36  ;;  %v1502_v42 = vld [vmem:[%s2725_s1 + $0x288] sm:$0xf0] }
  0x63   :  { %846 = vmatmul.bf16.vlgmr.msra.gmra.mxu0 %v2191_v2  ;;  %v1810_v2 = vld [vmem:[%s2725_s1 + $0x2c4] sm:$0xf]  ;;  %v1577_v40 = vor.u32 %v1820_v37, %v1574_v38  ;;  %v1566_v44 = vld [vmem:[%s2725_s1 + $0x308] sm:$0xf0]  ;;  %v1505_v45 = vor.u32 %v1802_v41, %v1502_v42  ;;  %v1840_v47 = vld [vmem:[%s2727_s3 + $0x30] sm:$0xff]  ;;  %s1167_s13 = sshll.u32 %s1887_s12, 4  ;;  %s1168_s13 = int_to_ptr.vmem [resolvable:$true] %s1167_s13 }
  0x64   :  { %890 = vmatpush.bf16.msrb.mxu0 %v1561_v58  ;;  %883 = vmatpush.bf16.msra.mxu3 %v1449_v5  ;;  %v1818_v43 = vld [vmem:[%s2725_s1 + $0x304] sm:$0xf]  ;;  %v1839_v48 = vld [vmem:[%s2727_s3 + $0x28] sm:$0xff]  ;;  %v143_v56 = vld [vmem:[%s2726_s2] sm:$0x3]  ;;  %s1169_s15 = sshll.u32 %s2731_s7, 4  ;;  %s1170_s15 = int_to_ptr.hbm [resolvable:$true] %s1169_s15 }
  0x65   :  { %903 = vmatpush.bf16.msrb.mxu1 %v1625_v61  ;;  %872 = vmatmul.bf16.vlgmr.msra.gmra.mxu2 %v2212_v13  ;;  %v1537_v13 = vor.u32 %v1810_v2, %v1534_v18  ;;  %v1569_v46 = vor.u32 %v1818_v43, %v1566_v44  ;;  %v1838_v49 = vld [vmem:[%s2727_s3 + $0x20] sm:$0xff]  ;;  %v1835_v50 = vld [vmem:[%s2727_s3 + $0x8] sm:$0xff]  ;;  %v145_v57 = vperm.slane %v143_v56, 0  ;;  %v1849_v7 = vld [vmem:[%s2727_s3 + $0x78] sm:$0xff] }
  0x66   :  { %1052 = vmatpush.bf16.msrb.mxu2 %v1841_v9  ;;  %859 = vmatmul.bf16.vlgmr.msra.gmra.mxu1 %v2171_v54  ;;  %v1598_v54 = vld [vmem:[%s2725_s1 + $0x348] sm:$0xf0]  ;;  %v1834_v55 = vld [vmem:[%s2727_s3] sm:$0xff]  ;;  %v1848_v9 = vld [vmem:[%s2727_s3 + $0x70] sm:$0xff] }
  0x67   :  { %v1601_v20 = vor.u32 %v1826_v19, %v1598_v54  ;;  %v1847_v11 = vld [vmem:[%s2727_s3 + $0x68] sm:$0xff]  ;;  %v1846_v2 = vld [vmem:[%s2727_s3 + $0x60] sm:$0xff]  ;;  %v1845_v19 = vld [vmem:[%s2727_s3 + $0x58] sm:$0xff] }
  0x68   :  { %891 = vmatpush.bf16.msrb.mxu0 %v1553_v6  ;;  %884 = vmatpush.bf16.msra.mxu3 %v1441_v16  ;;  %v1843_v21 = vld [vmem:[%s2727_s3 + $0x48] sm:$0xff]  ;;  %v1842_v24 = vld [vmem:[%s2727_s3 + $0x40] sm:$0xff] }
  0x69   :  { %904 = vmatpush.bf16.msrb.mxu1 %v1617_v10 }
  0x6a   :  { %1053 = vmatpush.bf16.msrb.mxu2 %v1840_v47  ;;  %v1857_v47 = vld [vmem:[%s2729_s5 + $0x38] sm:$0xff] }
  0x6b   :  { %885 = vmatmul.bf16.vlgmr.msra.gmra.mxu3 %v2357_v27  ;;  %v1518_v27 = vld [vmem:[%s2725_s1 + $0x2a8] sm:$0xf0] }
  0x6c   :  { %892 = vmatpush.bf16.msrb.mxu0 %v1545_v17  ;;  %v1521_v33 = vor.u32 %v1806_v28, %v1518_v27  ;;  %1065 = vmatpush.bf16.msrb.mxu3 %v1849_v7 }
  0x6d   :  { %905 = vmatpush.bf16.msrb.mxu1 %v1609_v1 }
  0x6e   :  { %1054 = vmatpush.bf16.msrb.mxu2 %v1839_v48  ;;  %v1856_v48 = vld [vmem:[%s2729_s5 + $0x30] sm:$0xff] }
  0x70   :  { %893 = vmatpush.bf16.msrb.mxu0 %v1537_v13  ;;  %1066 = vmatpush.bf16.msrb.mxu3 %v1848_v9  ;;  %v1844_v13 = vld [vmem:[%s2727_s3 + $0x50] sm:$0xff] }
  0x71   :  { %906 = vmatpush.bf16.msrb.mxu1 %v1601_v20 }
  0x72   :  { %1055 = vmatpush.bf16.msrb.mxu2 %v1838_v49  ;;  %v1855_v49 = vld [vmem:[%s2729_s5 + $0x28] sm:$0xff] }
  0x74   :  { %894 = vmatpush.bf16.msrb.mxu0 %v1529_v25  ;;  %1067 = vmatpush.bf16.msrb.mxu3 %v1847_v11  ;;  %v146_v25 = vperm.slane %v143_v56, 1  ;;  %v1859_v56 = vld [vmem:[%s2728_s4] ss:$0 sm:$0xff] }
  0x75   :  { %907 = vmatpush.bf16.msrb.mxu1 %v1593_v26 }
  0x78   :  { %895 = vmatpush.bf16.msrb.mxu0 %v1521_v33  ;;  %1068 = vmatpush.bf16.msrb.mxu3 %v1846_v2 }
  0x79   :  { %908 = vmatpush.bf16.msrb.mxu1 %v1585_v34 }
  0x7c   :  { %896 = vmatpush.bf16.msrb.mxu0 %v1513_v39  ;;  %1069 = vmatpush.bf16.msrb.mxu3 %v1845_v19 }
  0x7d   :  { %909 = vmatpush.bf16.msrb.mxu1 %v1577_v40 }
  0x80   :  { %897 = vmatpush.bf16.msrb.mxu0 %v1505_v45  ;;  %1070 = vmatpush.bf16.msrb.mxu3 %v1844_v13 }
  0x81   :  { %910 = vmatpush.bf16.msrb.mxu1 %v1569_v46 }
  0x83   :  { %898 = vmatmul.bf16.vlgmr.msrb.gmra.mxu0 %v2362_v29  ;;  %v1837_v29 = vld [vmem:[%s2727_s3 + $0x18] sm:$0xff] }
  0x84   :  { %911 = vmatmul.bf16.vlgmr.msrb.gmra.mxu1 %v2370_v32  ;;  %1056 = vmatpush.bf16.msrb.mxu2 %v1837_v29  ;;  %v1836_v32 = vld [vmem:[%s2727_s3 + $0x10] sm:$0xff]  ;;  %v1854_v29 = vld [vmem:[%s2729_s5 + $0x20] sm:$0xff] }
  0x85   :  { %1071 = vmatpush.bf16.msrb.mxu3 %v1843_v21  ;;  %1148 = vmatpush.bf16.msra.mxu0 %v1857_v47 }
  0x88   :  { %1057 = vmatpush.bf16.msrb.mxu2 %v1836_v32  ;;  %v1853_v32 = vld [vmem:[%s2729_s5 + $0x18] sm:$0xff] }
  0x89   :  { %1072 = vmatpush.bf16.msrb.mxu3 %v1842_v24  ;;  %1149 = vmatpush.bf16.msra.mxu0 %v1856_v48 }
  0x8c   :  { %1058 = vmatpush.bf16.msrb.mxu2 %v1835_v50  ;;  %v1852_v50 = vld [vmem:[%s2729_s5 + $0x10] sm:$0xff] }
  0x8d   :  { %1150 = vmatpush.bf16.msra.mxu0 %v1855_v49 }
  0x90   :  { %1059 = vmatpush.bf16.msrb.mxu2 %v1834_v55  ;;  %v1850_v55 = vld [vmem:[%s2729_s5] sm:$0xff] }
  0x91   :  { %1151 = vmatpush.bf16.msra.mxu0 %v1854_v29 }
  0x95   :  { %1152 = vmatpush.bf16.msra.mxu0 %v1853_v32 }
  0x99   :  { %1153 = vmatpush.bf16.msra.mxu0 %v1852_v50 }
  0xa0   :  { %v743_v51 = vpop.f32.mrf.mxu0 }
  0xa1   :  { %v756_v52 = vpop.f32.mrf.mxu1  ;;  %v744_v61 = vadd.f32 %v743_v51, %v145_v57 }
  0xa3   :  { %v757_v63 = vadd.f32 %v756_v52, %v744_v61 }
  0xa8   :  { %v769_v53 = vpop.f32.mrf.mxu2  ;;  %v745_v58 = vpop.f32.mrf.mxu0 }
  0xa9   :  { %v758_v59 = vpop.f32.mrf.mxu1  ;;  %v770_v3 = vadd.f32 %v769_v53, %v757_v63  ;;  %v1851_v53 = vld [vmem:[%s2729_s5 + $0x8] sm:$0xff]  ;;  %v1860_v63 = vld [vmem:[%s2730_s6] ss:$0 sm:$0xff] }
  0xaa   :  { %1154 = vmatpush.bf16.msra.mxu0 %v1851_v53 }
  0xad   :  { %v782_v60 = vpop.f32.mrf.mxu3 }
  0xae   :  { %v783_v4 = vadd.f32 %v782_v60, %v770_v3  ;;  %1155 = vmatpush.bf16.msra.mxu0 %v1850_v55 }
  0xb0   :  { %v771_v62 = vpop.f32.mrf.mxu2 }
  0xb5   :  { %v784_v0 = vpop.f32.mrf.mxu3 }
  0xc0   :  { %v795_v5 = vpop.f32.mrf.mxu0 }
  0xc1   :  { %v808_v6 = vpop.f32.mrf.mxu1  ;;  %v796_v8 = vadd.f32 %v795_v5, %v783_v4 }
  0xc3   :  { %v809_v10 = vadd.f32 %v808_v6, %v796_v8 }
  0xc8   :  { %v821_v12 = vpop.f32.mrf.mxu2  ;;  %v797_v15 = vpop.f32.mrf.mxu0 }
  0xc9   :  { %v822_v14 = vadd.f32 %v821_v12, %v809_v10  ;;  %v810_v16 = vpop.f32.mrf.mxu1 }
  0xcb   :  { %v916_v17 = vmax.f32 %v822_v14, 0.0 }
  0xcd   :  { %v918_v1 = vpack.c.bf16 %v916_v17, %v916_v17 }
  0xcf   :  { %1060 = vmatmul.bf16.vlgmr.msrb.gmra.mxu2 %v918_v1 }
  0xd0   :  { %v823_v54 = vpop.f32.mrf.mxu2 }
  0xd2   :  { %v834_v18 = vpop.f32.mrf.mxu3 }
  0xd3   :  { %v835_v30 = vadd.f32 %v834_v18, %v146_v25 }
  0xda   :  { %v836_v20 = vpop.f32.mrf.mxu3 }
  0xe0   :  { %v847_v22 = vpop.f32.mrf.mxu0 }
  0xe1   :  { %v848_v33 = vadd.f32 %v847_v22, %v835_v30 }
  0xe3   :  { %v860_v23 = vpop.f32.mrf.mxu1 }
  0xe4   :  { %v861_v35 = vadd.f32 %v860_v23, %v848_v33 }
  0xe8   :  { %v849_v26 = vpop.f32.mrf.mxu0  ;;  %v873_v28 = vpop.f32.mrf.mxu2 }
  0xe9   :  { %v874_v37 = vadd.f32 %v873_v28, %v861_v35 }
  0xeb   :  { %v862_v27 = vpop.f32.mrf.mxu1 }
  0xee   :  { %v886_v31 = vpop.f32.mrf.mxu3 }
  0xef   :  { %v887_v38 = vadd.f32 %v886_v31, %v874_v37 }
  0xf0   :  { %v875_v34 = vpop.f32.mrf.mxu2 }
  0xf6   :  { %v888_v36 = vpop.f32.mrf.mxu3 }
 0x100   :  { %v899_v39 = vpop.f32.mrf.mxu0 }
 0x101   :  { %v900_v40 = vadd.f32 %v899_v39, %v887_v38  ;;  %v912_v41 = vpop.f32.mrf.mxu1 }
 0x103   :  { %v913_v42 = vadd.f32 %v912_v41, %v900_v40 }
 0x105   :  { %v917_v43 = vmax.f32 %v913_v42, 0.0 }
 0x107   :  { %v919_v44 = vpack.c.bf16 %v917_v43, %v917_v43 }
 0x108   :  { %v901_v45 = vpop.f32.mrf.mxu0 }
 0x109   :  { %v914_v46 = vpop.f32.mrf.mxu1  ;;  %1073 = vmatmul.bf16.vlgmr.msrb.gmra.mxu3 %v919_v44 }
 0x152   :  { %v1061_v51 = vpop.f32.mrf.mxu2 }
 0x153   :  { %v1062_v57 = vadd.f32 %v1859_v56, %v1061_v51 }
 0x15a   :  { %v1063_v52 = vpop.f32.mrf.mxu2 }
 0x18c   :  { %v1074_v58 = vpop.f32.mrf.mxu3 }
 0x18d   :  { %v1075_v59 = vadd.f32 %v1074_v58, %v1062_v57 }
 0x18f   :  { %v1078_v60 = vmax.f32 %v1075_v59, 0.0 }
 0x191   :  { %v1079_v61 = vpack.c.bf16 %v1078_v60, %v1078_v60 }
 0x193   :  { %1156 = vmatmul.bf16.vlgmr.msra.gmra.mxu0 %v1079_v61 }
 0x194   :  { %v1076_v62 = vpop.f32.mrf.mxu3 }
 0x210   :  { %v1157_v0 = vpop.f32.mrf.mxu0 }
 0x211   :  { %v1158_v3 = vadd.f32 %v1860_v63, %v1157_v0 }
 0x213   :  { %1161 = vst [vmem:[#allocation2] sm:$0xff] %v1158_v3 }
 0x214   :  { %1172 = dma.vmem_to_hbm [thread:$0]  %s1168_s13, 128, %s1170_s15, [#allocation3]  }
 0x218   :  { %v1159_v4 = vpop.f32.mrf.mxu0 }
 0x219   :  { %1885 = dma.done.wait [#allocation3], 128  }
 0x21a   :  { %1886 = vsyncadd [#allocation3], 4294967168 }
 0x21b   :  { %1177 = vsyncpa [#allocation3], 1 }

</bundles_post_ra>
